<compile_context>
chip_gen: v5e
topology: v5e:2x2
jax: 0.10.0
libtpu: 0.0.40
codegen_flags: <defaults>
</compile_context>

<pallas_src>
import jax
import jax.numpy as jnp
from jax.experimental import pallas as pl
from jax.experimental.pallas import tpu as pltpu

_LANE = 128
_SUBLANE = 8
# Per-tile byte budget.  With double-buffered input + output (4 buffers in
# flight) this is 16 MiB of VMEM, comfortably under the 32 MiB limit we request
# below on every generation (v5e/v6e: 128 MiB physical, v7x: 64 MiB physical).
_TILE_BYTE_BUDGET = 4 * 1024 * 1024


def _identity_copy_kernel(x_ref, o_ref):
    # Entire data path of Unsqueeze: an elementwise identity.
    o_ref[...] = x_ref[...]


def _choose_lane_width(total_elems):
    """Largest lane-dense width (multiple of 128) that exactly divides the array."""
    for w in (2048, 1024, 512, 256, 128):
        if total_elems % w == 0:
            return w
    return None


def _copy_flat_2d(x2d):
    """Identity copy of a (rows, lanes) slab, lanes % 128 == 0."""
    rows, lanes = x2d.shape
    itemsize = x2d.dtype.itemsize

    # Row tile: as large as the byte budget allows, rounded to a sublane
    # multiple.  If the whole slab is smaller than that, use a single full
    # block (block dims equal to the full array dims are always legal).
    max_rows = max(_SUBLANE, _TILE_BYTE_BUDGET // (lanes * itemsize))
    max_rows = (max_rows // _SUBLANE) * _SUBLANE
    row_tile = rows if rows <= max_rows else max_rows

    grid = (pl.cdiv(rows, row_tile),)
    cost = pl.CostEstimate(
        flops=0,
        transcendentals=0,
        bytes_accessed=2 * rows * lanes * itemsize,
    )
    return pl.pallas_call(
        _identity_copy_kernel,
        out_shape=jax.ShapeDtypeStruct(x2d.shape, x2d.dtype),
        grid=grid,
        in_specs=[pl.BlockSpec((row_tile, lanes), lambda i: (i, 0))],
        out_specs=pl.BlockSpec((row_tile, lanes), lambda i: (i, 0)),
        compiler_params=pltpu.CompilerParams(
            dimension_semantics=("parallel",),
            vmem_limit_bytes=32 * 1024 * 1024,
        ),
        cost_estimate=cost,
    )(x2d)


def _copy_whole_array(x):
    """Fallback for tiny / non-128-divisible shapes: single full-array block."""
    return pl.pallas_call(
        _identity_copy_kernel,
        out_shape=jax.ShapeDtypeStruct(x.shape, x.dtype),
        cost_estimate=pl.CostEstimate(
            flops=0, transcendentals=0, bytes_accessed=2 * x.size * x.dtype.itemsize
        ),
    )(x)


def unsqueeze(x, dim=-1):
    """Pallas-backed equivalent of torch.Tensor.unsqueeze(dim)."""
    total = x.size
    lanes = _choose_lane_width(total)
    if lanes is None:
        # Odd total element count: copy the whole array as one block.
        copied = _copy_whole_array(x)
    else:
        # Free, contiguous reshape to a lane-dense 2D view for the copy kernel.
        flat = x.reshape(total // lanes, lanes)
        copied = _copy_flat_2d(flat).reshape(x.shape)

    # Axis insertion: pure metadata, identical semantics to torch.unsqueeze.
    return jnp.expand_dims(copied, dim)


class Unsqueeze:
    """Mirror of the PyTorch module (no parameters)."""

    def __init__(self, dim=-1):
        self.dim = dim

    def __call__(self, x):
        return unsqueeze(x, self.dim)


if __name__ == "__main__":
    key = jax.random.PRNGKey(0)
    # Small time-series-shaped input: (batch=2, channels=4, seq=16)  -> NCL
    x = jax.random.normal(key, (2, 4, 16), dtype=jnp.float32)

    module = Unsqueeze(dim=-1)
    y = jax.block_until_ready(module(x))
    assert y.shape == (2, 4, 16, 1), y.shape
    assert y.dtype == x.dtype
    assert jnp.array_equal(y[..., 0], x)

    # Non-default dim, like the module allows.
    y2 = jax.block_until_ready(Unsqueeze(dim=1)(x))
    assert y2.shape == (2, 1, 4, 16), y2.shape
    assert jnp.array_equal(y2[:, 0], x)

    # Odd element count exercises the whole-array fallback path.
    x_odd = jax.random.normal(jax.random.PRNGKey(1), (2, 3, 5), dtype=jnp.float32)
    y3 = jax.block_until_ready(Unsqueeze(dim=0)(x_odd))
    assert y3.shape == (1, 2, 3, 5), y3.shape
    assert jnp.array_equal(y3[0], x_odd)

    print("KERNEL_OK")
</pallas_src>

<mosaic_0001>
module attributes {stable_mosaic.version = 11 : i64} {
  func.func @_identity_copy_kernel(%arg0: i32, %arg1: memref<1x128xf32, #tpu.memory_space<vmem>>, %arg2: memref<1x128xf32, #tpu.memory_space<vmem>>) attributes {dimension_semantics = [#tpu.dimension_semantics<parallel>], iteration_bounds = array<i64: 1>, scalar_prefetch = 0 : i64, scratch_operands = 0 : i64, tpu.core_type = #tpu.core_type<tc>, window_params = [{transform_indices = @transform_0, window_bounds = array<i64: 1, 128>}, {transform_indices = @transform_1, window_bounds = array<i64: 1, 128>}]} {
    %c0 = arith.constant 0 : index
    %c0_0 = arith.constant 0 : index
    %0 = vector.load %arg1[%c0, %c0_0] : memref<1x128xf32, #tpu.memory_space<vmem>>, vector<1x128xf32>
    %c0_1 = arith.constant 0 : index
    %c0_2 = arith.constant 0 : index
    %1 = vector.load %arg2[%c0_1, %c0_2] : memref<1x128xf32, #tpu.memory_space<vmem>>, vector<1x128xf32>
    tpu.vector_store %arg2[%c0_1, %c0_2], %0 {strides = array<i32>} : memref<1x128xf32, #tpu.memory_space<vmem>>, vector<1x128xf32>,
    return
  }
  func.func @transform_0(%arg0: i32) -> (i32, i32) {
    %c0_i32 = arith.constant 0 : i32
    %c0_i32_0 = arith.constant 0 : i32
    return %arg0, %c0_i32 : i32, i32
  }
  func.func @transform_1(%arg0: i32) -> (i32, i32) {
    %c0_i32 = arith.constant 0 : i32
    %c0_i32_0 = arith.constant 0 : i32
    return %arg0, %c0_i32 : i32, i32
  }
}

</mosaic_0001>

<bundles_post_ra>
// kernel: tpu_custom_call.1
= control target key start
LH: loop header
LB: loop body
LE: loop exit
PB: predicated region body
PF: predicated region fallthrough
CT: control target
= control target key end

     0   :  { %6 = vsyncpa [#allocation3], 0  ;;  %s114_s0 = inlined_call_operand.hbm [shape: f32[1,128], index: 0, kind: input, shape index: {}]   ;;  %s115_s1 = inlined_call_operand.hbm [shape: f32[1,128], index: 1, kind: output, shape index: {}]  }
   0x1   :  { %7 = vsyncpa [#allocation4], 0  ;;  %s13_s8 = sshll.u32 %s114_s0, 4  ;;  %s96_s9 = smov [#allocation2]   ;;  %s14_s8 = int_to_ptr.hbm [resolvable:$true] %s13_s8 }
   0x2   :  { %s15_s10 = sshll.u32 %s96_s9, 4  ;;  %s16_s10 = int_to_ptr.vmem [resolvable:$true] %s15_s10 }
   0x3   :  { %18 = dma.hbm_to_vmem [thread:$0]  %s14_s8, 16, %s16_s10, [#allocation3]  }
   0x4   :  { %92 = dma.done.wait [#allocation3], 16  }
   0x5   :  { %93 = vsyncadd [#allocation3], 4294967280  ;;  %s97_s11 = smov [#allocation5]   ;;  %s32_s15 = sshll.u32 %s115_s1, 4  ;;  %v23_v0 = vld [vmem:[#allocation2] sm:$0x1]  ;;  %s33_s15 = int_to_ptr.hbm [resolvable:$true] %s32_s15 }
   0x6   :  { %s30_s12 = sshll.u32 %s97_s11, 4  ;;  %24 = vst [vmem:[#allocation5] sm:$0x1] %v23_v0  ;;  %s31_s12 = int_to_ptr.vmem [resolvable:$true] %s30_s12 }
   0x7   :  { %35 = dma.vmem_to_hbm [thread:$0]  %s31_s12, 16, %s33_s15, [#allocation4]  }
   0x8   :  { %94 = dma.done.wait [#allocation4], 16  }
   0x9   :  { %95 = vsyncadd [#allocation4], 4294967280 }
   0xa   :  { %40 = vsyncpa [#allocation3], 1 }
   0xb   :  { %41 = vsyncpa [#allocation4], 1 }

</bundles_post_ra>
